<compile_context>
chip_gen: v6e
topology: v6e:2x2x1
jax: 0.10.0
libtpu: 0.0.40
codegen_flags: <defaults>
</compile_context>

<pallas_src>
import functools

import jax
import jax.numpy as jnp
from jax.experimental import pallas as pl
from jax.experimental.pallas import tpu as pltpu

EPS = 1e-5
L_TILE_TARGET = 1024            # target lane-tile along the Ho*Wo axis
VMEM_LIMIT = 48 * 1024 * 1024   # explicit cap: fits v7x's 64 MiB physical VMEM


def _round_up(x, m):
    return (x + m - 1) // m * m


def _conv_stats_kernel(w_ref, p_ref, y_ref, s1_ref, s2_ref):
    """y = W @ P for one (group, image, L-tile); emit per-channel sum / sumsq."""
    y = jnp.dot(w_ref[...], p_ref[...], preferred_element_type=jnp.float32)
    y_ref[...] = y.astype(y_ref.dtype)
    # Zero-padded L columns contribute 0 to both sums; the true element count
    # is used as the divisor later, so no masking is needed here.
    s1_ref[...] = jnp.sum(y, axis=-1, keepdims=True)
    s2_ref[...] = jnp.sum(y * y, axis=-1, keepdims=True)


def _bn_apply_kernel(y_ref, scale_ref, bias_ref, o_ref):
    """out = y * scale + bias  (BN folded into a per-channel affine)."""
    y = y_ref[...].astype(jnp.float32)
    o_ref[...] = (y * scale_ref[...] + bias_ref[...]).astype(o_ref.dtype)


def _im2col(x, k_h, k_w, stride, padding):
    """x: (N, Cin, H, W) -> (N, Cin, kH*kW, Ho, Wo), taps kh-major / kw-minor."""
    n, cin, h, w = x.shape
    h_out = (h + 2 * padding - k_h) // stride + 1
    w_out = (w + 2 * padding - k_w) // stride + 1
    xpad = jnp.pad(x, ((0, 0), (0, 0), (padding, padding), (padding, padding)))
    cols = []
    for kh in range(k_h):
        for kw in range(k_w):
            cols.append(
                xpad[:, :, kh:kh + stride * h_out:stride,
                     kw:kw + stride * w_out:stride])
    return jnp.stack(cols, axis=2), h_out, w_out


@functools.partial(jax.jit, static_argnames=("stride", "groups", "compute_dtype"))
def cb_forward(x, weight, gamma, beta, *, stride=1, groups=1,
               compute_dtype=jnp.bfloat16):
    """CB.forward: conv2d(no bias, padding=(k-1)//2) -> BatchNorm2d (train mode)."""
    n, cin, h, w = x.shape
    cout, cin_g, k_h, k_w = weight.shape
    assert cin_g == cin // groups
    padding = (k_h - 1) // 2
    cout_g = cout // groups
    k_dim = cin_g * k_h * k_w

    # TODO(synk): the im2col patch tensor (kH*kW-expanded) is still materialized
    # in HBM by the wrapper; a fully fused in-kernel tap-accumulation conv would
    # remove that traffic entirely.
    patches, h_out, w_out = _im2col(x.astype(compute_dtype), k_h, k_w,
                                    stride, padding)
    hw = h_out * w_out
    l_true = float(n * hw)

    # Lane tiling of the spatial axis: multiple of 128, close to L_TILE_TARGET.
    hw128 = _round_up(hw, 128)
    n_l = -(-hw128 // L_TILE_TARGET)
    tl = _round_up(-(-hw128 // n_l), 128)
    hw_pad = tl * n_l

    # (N, Cin, kHkW, Ho, Wo) -> (N, G, K, HW): pure reshape, no big transpose.
    patches = patches.reshape(n, groups, k_dim, hw)
    if hw_pad != hw:
        patches = jnp.pad(patches, ((0, 0), (0, 0), (0, 0), (0, hw_pad - hw)))

    w_g = weight.reshape(groups, cout_g, k_dim).astype(compute_dtype)

    grid = (groups, n, n_l)
    cparams = pltpu.CompilerParams(
        dimension_semantics=("parallel", "parallel", "parallel"),
        vmem_limit_bytes=VMEM_LIMIT,
    )

    # ---- pass 1: conv matmul + streaming per-channel sums --------------------
    y_inter, s1_t, s2_t = pl.pallas_call(
        _conv_stats_kernel,
        out_shape=(
            jax.ShapeDtypeStruct((n, groups, cout_g, hw_pad), compute_dtype),
            jax.ShapeDtypeStruct((groups, n, n_l, cout_g, 1), jnp.float32),
            jax.ShapeDtypeStruct((groups, n, n_l, cout_g, 1), jnp.float32),
        ),
        grid=grid,
        in_specs=[
            pl.BlockSpec((None, cout_g, k_dim), lambda g, i, l: (g, 0, 0)),
            pl.BlockSpec((None, None, k_dim, tl), lambda g, i, l: (i, g, 0, l)),
        ],
        out_specs=(
            pl.BlockSpec((None, None, cout_g, tl), lambda g, i, l: (i, g, 0, l)),
            pl.BlockSpec((None, None, None, cout_g, 1),
                         lambda g, i, l: (g, i, l, 0, 0)),
            pl.BlockSpec((None, None, None, cout_g, 1),
                         lambda g, i, l: (g, i, l, 0, 0)),
        ),
        compiler_params=cparams,
    )(w_g, patches)

    # ---- fold BN stats into per-channel scale / bias (tiny, plain JAX) -------
    s1 = jnp.sum(s1_t, axis=(1, 2))[:, :, 0]              # (G, Cout_g)
    s2 = jnp.sum(s2_t, axis=(1, 2))[:, :, 0]
    mean = s1 / l_true
    var = jnp.maximum(s2 / l_true - mean * mean, 0.0)      # biased variance
    scale = gamma.reshape(groups, cout_g).astype(jnp.float32) \
        * jax.lax.rsqrt(var + EPS)
    bias = beta.reshape(groups, cout_g).astype(jnp.float32) - mean * scale
    scale_g = scale[:, :, None]
    bias_g = bias[:, :, None]

    # ---- pass 2: lane-dense BN apply ------------------------------------------
    out = pl.pallas_call(
        _bn_apply_kernel,
        out_shape=jax.ShapeDtypeStruct((n, groups, cout_g, hw_pad), x.dtype),
        grid=grid,
        in_specs=[
            pl.BlockSpec((None, None, cout_g, tl), lambda g, i, l: (i, g, 0, l)),
            pl.BlockSpec((None, cout_g, 1), lambda g, i, l: (g, 0, 0)),
            pl.BlockSpec((None, cout_g, 1), lambda g, i, l: (g, 0, 0)),
        ],
        out_specs=pl.BlockSpec((None, None, cout_g, tl),
                               lambda g, i, l: (i, g, 0, l)),
        compiler_params=cparams,
    )(y_inter, scale_g, bias_g)

    # (N, G, Cout_g, HW_pad) -> crop -> (N, Cout, Ho, Wo)
    return out[:, :, :, :hw].reshape(n, cout, h_out, w_out)


def _reference(x, weight, gamma, beta, *, stride, groups):
    padding = (weight.shape[2] - 1) // 2
    y = jax.lax.conv_general_dilated(
        x, weight, (stride, stride), [(padding, padding), (padding, padding)],
        dimension_numbers=("NCHW", "OIHW", "NCHW"), feature_group_count=groups)
    mean = y.mean(axis=(0, 2, 3), keepdims=True)
    var = jnp.square(y - mean).mean(axis=(0, 2, 3), keepdims=True)
    return (y - mean) * jax.lax.rsqrt(var + EPS) * gamma.reshape(1, -1, 1, 1) \
        + beta.reshape(1, -1, 1, 1)


if __name__ == "__main__":
    key = jax.random.PRNGKey(0)

    # --- case 1: CB(nIn=4, nOut=8, kSize=3, stride=1, groups=1), x:(2,4,16,16)
    n_in, n_out, k_size, stride, groups = 4, 8, 3, 1, 1
    k_x, k_w, k_g, k_b = jax.random.split(key, 4)
    x = jax.random.normal(k_x, (2, n_in, 16, 16), dtype=jnp.float32)
    weight = 0.1 * jax.random.normal(
        k_w, (n_out, n_in // groups, k_size, k_size), dtype=jnp.float32)
    gamma = 1.0 + 0.1 * jax.random.normal(k_g, (n_out,), dtype=jnp.float32)
    beta = 0.1 * jax.random.normal(k_b, (n_out,), dtype=jnp.float32)

    ref = _reference(x, weight, gamma, beta, stride=stride, groups=groups)

    # f32 MXU path: tight semantic check against the f32 reference.
    out_f32 = jax.block_until_ready(
        cb_forward(x, weight, gamma, beta, stride=stride, groups=groups,
                   compute_dtype=jnp.float32))
    assert out_f32.shape == ref.shape == (2, n_out, 16, 16)
    assert jnp.allclose(out_f32, ref, atol=1e-4, rtol=1e-4)

    # bf16 MXU path (default / perf path): looser tolerance vs f32 reference.
    out_bf16 = jax.block_until_ready(
        cb_forward(x, weight, gamma, beta, stride=stride, groups=groups))
    assert out_bf16.shape == ref.shape
    assert jnp.allclose(out_bf16, ref, atol=5e-2, rtol=5e-2)

    # --- case 2: grouped, strided: CB(nIn=8, nOut=8, kSize=3, stride=2, groups=2)
    n_in2, n_out2, stride2, groups2 = 8, 8, 2, 2
    k_x2, k_w2, k_g2, k_b2 = jax.random.split(jax.random.PRNGKey(1), 4)
    x2 = jax.random.normal(k_x2, (2, n_in2, 16, 16), dtype=jnp.float32)
    weight2 = 0.1 * jax.random.normal(
        k_w2, (n_out2, n_in2 // groups2, k_size, k_size), dtype=jnp.float32)
    gamma2 = 1.0 + 0.1 * jax.random.normal(k_g2, (n_out2,), dtype=jnp.float32)
    beta2 = 0.1 * jax.random.normal(k_b2, (n_out2,), dtype=jnp.float32)

    ref2 = _reference(x2, weight2, gamma2, beta2, stride=stride2, groups=groups2)
    out2 = jax.block_until_ready(
        cb_forward(x2, weight2, gamma2, beta2, stride=stride2, groups=groups2,
                   compute_dtype=jnp.float32))
    assert out2.shape == ref2.shape == (2, n_out2, 8, 8)
    assert jnp.allclose(out2, ref2, atol=1e-4, rtol=1e-4)

    print("KERNEL_OK")
</pallas_src>

<mosaic_0001>
module attributes {stable_mosaic.version = 11 : i64} {
  func.func @_conv_stats_kernel(%arg0: i32, %arg1: i32, %arg2: i32, %arg3: memref<1x8x36xf32, #tpu.memory_space<vmem>>, %arg4: memref<1x1x36x256xf32, #tpu.memory_space<vmem>>, %arg5: memref<1x1x8x256xf32, #tpu.memory_space<vmem>>, %arg6: memref<1x1x1x8x1xf32, #tpu.memory_space<vmem>>, %arg7: memref<1x1x1x8x1xf32, #tpu.memory_space<vmem>>) attributes {dimension_semantics = [#tpu.dimension_semantics<parallel>, #tpu.dimension_semantics<parallel>, #tpu.dimension_semantics<parallel>], iteration_bounds = array<i64: 1, 2, 1>, scalar_prefetch = 0 : i64, scratch_operands = 0 : i64, tpu.core_type = #tpu.core_type<tc>, window_params = [{transform_indices = @transform_0, window_bounds = array<i64: 1, 8, 36>}, {transform_indices = @transform_1, window_bounds = array<i64: 1, 1, 36, 256>}, {transform_indices = @transform_2, window_bounds = array<i64: 1, 1, 8, 256>}, {transform_indices = @transform_3, window_bounds = array<i64: 1, 1, 1, 8, 1>}, {transform_indices = @transform_4, window_bounds = array<i64: 1, 1, 1, 8, 1>}]} {
    %c0 = arith.constant 0 : index
    %c0_0 = arith.constant 0 : index
    %c0_1 = arith.constant 0 : index
    %0 = vector.load %arg3[%c0, %c0_0, %c0_1] : memref<1x8x36xf32, #tpu.memory_space<vmem>>, vector<1x8x36xf32>
    %1 = vector.shape_cast %0 : vector<1x8x36xf32> to vector<8x36xf32>
    %c0_2 = arith.constant 0 : index
    %c0_3 = arith.constant 0 : index
    %c0_4 = arith.constant 0 : index
    %c0_5 = arith.constant 0 : index
    %2 = vector.load %arg4[%c0_2, %c0_3, %c0_4, %c0_5] : memref<1x1x36x256xf32, #tpu.memory_space<vmem>>, vector<1x1x36x256xf32>
    %3 = vector.shape_cast %2 : vector<1x1x36x256xf32> to vector<36x256xf32>
    %cst = arith.constant dense<0.000000e+00> : vector<8x256xf32>
    %4 = tpu.matmul %1, %3, %cst {dimension_numbers = #tpu.dot_dimension_numbers<[1], [0], [0], [1], [0, 0, 1, 1], [], []>} : vector<8x36xf32>, vector<36x256xf32>, vector<8x256xf32> -> vector<8x256xf32>
    %c0_6 = arith.constant 0 : index
    %c0_7 = arith.constant 0 : index
    %c0_8 = arith.constant 0 : index
    %c0_9 = arith.constant 0 : index
    %5 = vector.load %arg5[%c0_6, %c0_7, %c0_8, %c0_9] : memref<1x1x8x256xf32, #tpu.memory_space<vmem>>, vector<1x1x8x256xf32>
    %6 = vector.shape_cast %5 : vector<1x1x8x256xf32> to vector<8x256xf32>
    %7 = vector.shape_cast %4 : vector<8x256xf32> to vector<1x1x8x256xf32>
    tpu.vector_store %arg5[%c0_6, %c0_7, %c0_8, %c0_9], %7 {strides = array<i32>} : memref<1x1x8x256xf32, #tpu.memory_space<vmem>>, vector<1x1x8x256xf32>,
    %cst_10 = arith.constant dense<0.000000e+00> : vector<8xf32>
    %8 = vector.multi_reduction <add>, %4, %cst_10 [1] : vector<8x256xf32> to vector<8xf32>
    %9 = vector.shape_cast %8 : vector<8xf32> to vector<8x1xf32>
    %c0_11 = arith.constant 0 : index
    %c0_12 = arith.constant 0 : index
    %c0_13 = arith.constant 0 : index
    %c0_14 = arith.constant 0 : index
    %c0_15 = arith.constant 0 : index
    %10 = vector.load %arg6[%c0_11, %c0_12, %c0_13, %c0_14, %c0_15] : memref<1x1x1x8x1xf32, #tpu.memory_space<vmem>>, vector<1x1x1x8x1xf32>
    %11 = vector.shape_cast %10 : vector<1x1x1x8x1xf32> to vector<8x1xf32>
    %12 = vector.shape_cast %9 : vector<8x1xf32> to vector<1x1x1x8x1xf32>
    tpu.vector_store %arg6[%c0_11, %c0_12, %c0_13, %c0_14, %c0_15], %12 {strides = array<i32>} : memref<1x1x1x8x1xf32, #tpu.memory_space<vmem>>, vector<1x1x1x8x1xf32>,
    %13 = arith.mulf %4, %4 : vector<8x256xf32>
    %cst_16 = arith.constant dense<0.000000e+00> : vector<8xf32>
    %14 = vector.multi_reduction <add>, %13, %cst_16 [1] : vector<8x256xf32> to vector<8xf32>
    %15 = vector.shape_cast %14 : vector<8xf32> to vector<8x1xf32>
    %c0_17 = arith.constant 0 : index
    %c0_18 = arith.constant 0 : index
    %c0_19 = arith.constant 0 : index
    %c0_20 = arith.constant 0 : index
    %c0_21 = arith.constant 0 : index
    %16 = vector.load %arg7[%c0_17, %c0_18, %c0_19, %c0_20, %c0_21] : memref<1x1x1x8x1xf32, #tpu.memory_space<vmem>>, vector<1x1x1x8x1xf32>
    %17 = vector.shape_cast %16 : vector<1x1x1x8x1xf32> to vector<8x1xf32>
    %18 = vector.shape_cast %15 : vector<8x1xf32> to vector<1x1x1x8x1xf32>
    tpu.vector_store %arg7[%c0_17, %c0_18, %c0_19, %c0_20, %c0_21], %18 {strides = array<i32>} : memref<1x1x1x8x1xf32, #tpu.memory_space<vmem>>, vector<1x1x1x8x1xf32>,
    return
  }
  func.func @transform_0(%arg0: i32, %arg1: i32, %arg2: i32) -> (i32, i32, i32) {
    %c0_i32 = arith.constant 0 : i32
    %c0_i32_0 = arith.constant 0 : i32
    %c0_i32_1 = arith.constant 0 : i32
    return %arg0, %c0_i32, %c0_i32_0 : i32, i32, i32
  }
  func.func @transform_1(%arg0: i32, %arg1: i32, %arg2: i32) -> (i32, i32, i32, i32) {
    %c0_i32 = arith.constant 0 : i32
    %c0_i32_0 = arith.constant 0 : i32
    return %arg1, %arg0, %c0_i32, %arg2 : i32, i32, i32, i32
  }
  func.func @transform_2(%arg0: i32, %arg1: i32, %arg2: i32) -> (i32, i32, i32, i32) {
    %c0_i32 = arith.constant 0 : i32
    %c0_i32_0 = arith.constant 0 : i32
    return %arg1, %arg0, %c0_i32, %arg2 : i32, i32, i32, i32
  }
  func.func @transform_3(%arg0: i32, %arg1: i32, %arg2: i32) -> (i32, i32, i32, i32, i32) {
    %c0_i32 = arith.constant 0 : i32
    %c0_i32_0 = arith.constant 0 : i32
    %c0_i32_1 = arith.constant 0 : i32
    return %arg0, %arg1, %arg2, %c0_i32, %c0_i32_0 : i32, i32, i32, i32, i32
  }
  func.func @transform_4(%arg0: i32, %arg1: i32, %arg2: i32) -> (i32, i32, i32, i32, i32) {
    %c0_i32 = arith.constant 0 : i32
    %c0_i32_0 = arith.constant 0 : i32
    %c0_i32_1 = arith.constant 0 : i32
    return %arg0, %arg1, %arg2, %c0_i32, %c0_i32_0 : i32, i32, i32, i32, i32
  }
}

module attributes {stable_mosaic.version = 11 : i64} {
  func.func @_bn_apply_kernel(%arg0: i32, %arg1: i32, %arg2: i32, %arg3: memref<1x1x8x256xf32, #tpu.memory_space<vmem>>, %arg4: memref<1x8x1xf32, #tpu.memory_space<vmem>>, %arg5: memref<1x8x1xf32, #tpu.memory_space<vmem>>, %arg6: memref<1x1x8x256xf32, #tpu.memory_space<vmem>>) attributes {dimension_semantics = [#tpu.dimension_semantics<parallel>, #tpu.dimension_semantics<parallel>, #tpu.dimension_semantics<parallel>], iteration_bounds = array<i64: 1, 2, 1>, scalar_prefetch = 0 : i64, scratch_operands = 0 : i64, tpu.core_type = #tpu.core_type<tc>, window_params = [{transform_indices = @transform_0, window_bounds = array<i64: 1, 1, 8, 256>}, {transform_indices = @transform_1, window_bounds = array<i64: 1, 8, 1>}, {transform_indices = @transform_2, window_bounds = array<i64: 1, 8, 1>}, {transform_indices = @transform_3, window_bounds = array<i64: 1, 1, 8, 256>}]} {
    %c0 = arith.constant 0 : index
    %c0_0 = arith.constant 0 : index
    %c0_1 = arith.constant 0 : index
    %c0_2 = arith.constant 0 : index
    %0 = vector.load %arg3[%c0, %c0_0, %c0_1, %c0_2] : memref<1x1x8x256xf32, #tpu.memory_space<vmem>>, vector<1x1x8x256xf32>
    %1 = vector.shape_cast %0 : vector<1x1x8x256xf32> to vector<8x256xf32>
    %c0_3 = arith.constant 0 : index
    %c0_4 = arith.constant 0 : index
    %c0_5 = arith.constant 0 : index
    %2 = vector.load %arg4[%c0_3, %c0_4, %c0_5] : memref<1x8x1xf32, #tpu.memory_space<vmem>>, vector<1x8x1xf32>
    %3 = vector.shape_cast %2 : vector<1x8x1xf32> to vector<8x1xf32>
    %4 = vector.broadcast %3 : vector<8x1xf32> to vector<8x256xf32>
    %5 = arith.mulf %1, %4 : vector<8x256xf32>
    %c0_6 = arith.constant 0 : index
    %c0_7 = arith.constant 0 : index
    %c0_8 = arith.constant 0 : index
    %6 = vector.load %arg5[%c0_6, %c0_7, %c0_8] : memref<1x8x1xf32, #tpu.memory_space<vmem>>, vector<1x8x1xf32>
    %7 = vector.shape_cast %6 : vector<1x8x1xf32> to vector<8x1xf32>
    %8 = vector.broadcast %7 : vector<8x1xf32> to vector<8x256xf32>
    %9 = arith.addf %5, %8 : vector<8x256xf32>
    %c0_9 = arith.constant 0 : index
    %c0_10 = arith.constant 0 : index
    %c0_11 = arith.constant 0 : index
    %c0_12 = arith.constant 0 : index
    %10 = vector.load %arg6[%c0_9, %c0_10, %c0_11, %c0_12] : memref<1x1x8x256xf32, #tpu.memory_space<vmem>>, vector<1x1x8x256xf32>
    %11 = vector.shape_cast %10 : vector<1x1x8x256xf32> to vector<8x256xf32>
    %12 = vector.shape_cast %9 : vector<8x256xf32> to vector<1x1x8x256xf32>
    tpu.vector_store %arg6[%c0_9, %c0_10, %c0_11, %c0_12], %12 {strides = array<i32>} : memref<1x1x8x256xf32, #tpu.memory_space<vmem>>, vector<1x1x8x256xf32>,
    return
  }
  func.func @transform_0(%arg0: i32, %arg1: i32, %arg2: i32) -> (i32, i32, i32, i32) {
    %c0_i32 = arith.constant 0 : i32
    %c0_i32_0 = arith.constant 0 : i32
    return %arg1, %arg0, %c0_i32, %arg2 : i32, i32, i32, i32
  }
  func.func @transform_1(%arg0: i32, %arg1: i32, %arg2: i32) -> (i32, i32, i32) {
    %c0_i32 = arith.constant 0 : i32
    %c0_i32_0 = arith.constant 0 : i32
    %c0_i32_1 = arith.constant 0 : i32
    return %arg0, %c0_i32, %c0_i32_0 : i32, i32, i32
  }
  func.func @transform_2(%arg0: i32, %arg1: i32, %arg2: i32) -> (i32, i32, i32) {
    %c0_i32 = arith.constant 0 : i32
    %c0_i32_0 = arith.constant 0 : i32
    %c0_i32_1 = arith.constant 0 : i32
    return %arg0, %c0_i32, %c0_i32_0 : i32, i32, i32
  }
  func.func @transform_3(%arg0: i32, %arg1: i32, %arg2: i32) -> (i32, i32, i32, i32) {
    %c0_i32 = arith.constant 0 : i32
    %c0_i32_0 = arith.constant 0 : i32
    return %arg1, %arg0, %c0_i32, %arg2 : i32, i32, i32, i32
  }
}

</mosaic_0001>

<bundles_post_ra>
// kernel: cb_forward.3
= control target key start
LH: loop header
LB: loop body
LE: loop exit
PB: predicated region body
PF: predicated region fallthrough
CT: control target
= control target key end

     0   :  { %s523_s12 = smov 0   ;;  %s525_s13 = smov 0   ;;  %s559_s0 = inlined_call_operand.vmem [shape: f32[2,1,8,256], index: 0, kind: input, shape index: {}]   ;;  %s560_s1 = inlined_call_operand.vmem [shape: f32[1,8,1], index: 1, kind: input, shape index: {}]   ;;  %s561_s2 = inlined_call_operand.vmem [shape: f32[1,8,1], index: 2, kind: input, shape index: {}]   ;;  %s562_s3 = inlined_call_operand.vmem [shape: f32[2,1,8,256], index: 3, kind: output, shape index: {}]  }
   0x1   :  { %s527_s14 = smov 0  }
   0x2 LB: > { %s28_s15 = sadd.s32 1, %s496_s13  ;;  %p443_p0 = scmp.ge.s32.totalorder %s500_s14, 1  ;;  %s500_s14 = sphi %s527_s14, %s13_s14   ;;  %s496_s13 = sphi %s525_s13, %s564_s13   ;;  %s492_s12 = sphi %s523_s12, %s563_s12  }
   0x3   : > { %p30_p1 = scmp.ge.s32.totalorder %s28_s15, 2  ;;  %p191_p2 = scmp.lt.s32.totalorder %s500_s14, 3 }
   0x5   : > { %s566_s15 = smov (%p30_p1, %s28_s15), 0  ;;  %p192_p3 = pnand %p443_p0, %p191_p2 }
   0x6   : > { %p240_p4 = scmp.lt.s32.totalorder (!%p192_p3), %s492_s12, 1 }
   0x7   : > { %195 = sbr.rel (%p192_p3) target bundleno = 145 (0x91), region = 32 }
   0xc   : > { %v277_v0 = vld [vmem:[%s560_s1] sm:$0xff]  ;;  %v502_v1 = vmov 0   ;;  %s568_s12 = smov (!%p240_p4, %s492_s12), 1 }
   0xd   : > { %477 = vset.pattern.permute.xlu0 %v502_v1  ;;  %v285_v2 = vld [vmem:[%s561_s2] sm:$0xff]  ;;  %s450_s20 = sshll.u32 %s568_s12, 4 }
   0xe   : > { %280 = vperm.xlu0 %477, %v277_v0   ;;  %s251_s23 = scalar_lea.vmem %s559_s0, %s450_s20  ;;  %s273_s26 = scalar_lea.vmem %s562_s3, %s450_s20 }
   0xf   : > { %v275_v4 = vld [vmem:[%s251_s23] sm:$0xff]  ;;  %v276_v5 = vld [vmem:[%s251_s23 + $0x8] sm:$0xff] }
  0x12   : > { %288 = vperm.xlu0 %477, %v285_v2  }
  0x89   : > { %v281_v3 = vpop.permute.xlu0 %280 }
  0x8a   : > { %v283_v6 = vmul.f32 %v281_v3, %v275_v4  ;;  %v284_v7 = vmul.f32 %v281_v3, %v276_v5 }
  0x8d   : > { %v289_v8 = vpop.permute.xlu0 %288 }
  0x8e   : > { %v291_v9 = vadd.f32 %v289_v8, %v283_v6  ;;  %v292_v10 = vadd.f32 %v289_v8, %v284_v7 }
  0x90   : > { %293 = vst [vmem:[%s273_s26] sm:$0xff] %v291_v9  ;;  %294 = vst [vmem:[%s273_s26 + $0x8] sm:$0xff] %v292_v10 }
  0x91 PF: > { %s13_s14 = sadd.s32 1, %s500_s14   ;;  %s563_s12 = smov %s496_s13 }
  0x92   : > { %p10_p5 = scmp.ge.s32.totalorder %s13_s14, 4   ;;  %s564_s13 = smov %s566_s15 }
  0x94   :  { %12 = sbr.rel (!%p10_p5) target bundleno = 2 (0x2), region = 68 }

// kernel: cb_forward.2
= control target key start
LH: loop header
LB: loop body
LE: loop exit
PB: predicated region body
PF: predicated region fallthrough
CT: control target
= control target key end

     0   :  { %s782_s15 = smov 0   ;;  %s784_s16 = smov 0   ;;  %s829_s0 = inlined_call_operand.vmem [shape: f32[1,8,36], index: 0, kind: input, shape index: {}]   ;;  %s830_s1 = inlined_call_operand.vmem [shape: f32[2,1,36,256], index: 1, kind: input, shape index: {}]   ;;  %s831_s2 = inlined_call_operand.vmem [shape: f32[2,1,8,256], index: 2, kind: output, shape index: {0}]   ;;  %s832_s3 = inlined_call_operand.vmem [shape: f32[1,2,1,8,1], index: 3, kind: output, shape index: {1}]   ;;  %s833_s4 = inlined_call_operand.vmem [shape: f32[1,2,1,8,1], index: 4, kind: output, shape index: {2}]  }
   0x1   :  { %s786_s17 = smov 0  }
   0x2 LB: > { %s30_s18 = sadd.s32 1, %s750_s16  ;;  %p694_p0 = scmp.ge.s32.totalorder %s754_s17, 1  ;;  %s754_s17 = sphi %s786_s17, %s15_s17   ;;  %s750_s16 = sphi %s784_s16, %s835_s16   ;;  %s746_s15 = sphi %s782_s15, %s834_s15  }
   0x3   : > { %p32_p1 = scmp.ge.s32.totalorder %s30_s18, 2  ;;  %p220_p2 = scmp.lt.s32.totalorder %s754_s17, 3 }
   0x5   : > { %s837_s18 = smov (%p32_p1, %s30_s18), 0  ;;  %p221_p3 = pnand %p694_p0, %p220_p2 }
   0x6   : > { %p293_p4 = scmp.lt.s32.totalorder (!%p221_p3), %s746_s15, 1 }
   0x7   : > { %224 = sbr.rel (%p221_p3) target bundleno = 367 (0x16f), region = 28 }
   0xc   : > { %v756_v0 = vmov 0.0   ;;  %s839_s15 = smov (!%p293_p4, %s746_s15), 1  ;;  %vm357_vm0 = vcmask 1043456   ;;  %v342_v11 = vld [vmem:[%s829_s0] sm:$0xff]  ;;  %vm353_vm1 = vcmask 293888   ;;  %vm440_vm2 = vcmask 7168  }
   0xd   : > { %428 = vmatprep.mubr.f32.mxu0 %v756_v0  ;;  %s706_s19 = smul.u32 80, %s839_s15  ;;  %s705_s25 = sshll.u32 %s839_s15, 4 }
   0xe   : > { %s318_s28 = scalar_lea.vmem %s831_s2, %s705_s25  ;;  %s698_s29 = sshll.u32 %s839_s15, 3 }
   0xf   : > { %s304_s22 = scalar_lea.vmem %s830_s1, %s706_s19  ;;  %s330_s6 = scalar_lea.vmem %s832_s3, %s698_s29 }
  0x10   : > { %v352_v1 = vld [vmem:[%s304_s22 + $0x48] sm:$0xf]  ;;  %v351_v2 = vld [vmem:[%s304_s22 + $0x40] sm:$0xf]  ;;  %v350_v3 = vld [vmem:[%s304_s22 + $0x38] sm:$0xff]  ;;  %s341_s9 = scalar_lea.vmem %s833_s4, %s698_s29 }
  0x11   : > { %700 = vmatprep.subr.msk.mxu0 %vm357_vm0, %v352_v1  ;;  %v349_v4 = vld [vmem:[%s304_s22 + $0x30] sm:$0xff]  ;;  %v348_v5 = vld [vmem:[%s304_s22 + $0x28] sm:$0xff]  ;;  %v347_v6 = vld [vmem:[%s304_s22 + $0x20] sm:$0xff] }
  0x12   : > { %701 = vmatpush1.msk.msra.mxu0 %vm357_vm0, %v351_v2  ;;  %v346_v7 = vld [vmem:[%s304_s22 + $0x18] sm:$0xff]  ;;  %v345_v8 = vld [vmem:[%s304_s22 + $0x10] sm:$0xff]  ;;  %v344_v9 = vld [vmem:[%s304_s22 + $0x8] sm:$0xff] }
  0x13   : > { %388 = vmatprep.subr.mxu0 %v350_v3  ;;  %v343_v10 = vld [vmem:[%s304_s22] sm:$0xff] }
  0x14   : > { %389 = vmatpush1.msra.mxu0 %v349_v4 }
  0x15   : > { %390 = vmatprep.subr.mxu0 %v348_v5 }
  0x16   : > { %391 = vmatpush1.msra.mxu0 %v347_v6 }
  0x17   : > { %392 = vmatprep.subr.mxu0 %v346_v7 }
  0x18   : > { %393 = vmatpush1.msra.mxu0 %v345_v8 }
  0x19   : > { %394 = vmatprep.subr.mxu0 %v344_v9 }
  0x1a   : > { %395 = vmatpush1.msra.mxu0 %v343_v10 }
  0x1b   : > { %702 = vmatmul.mubr.msk.f32.vlgmr.msra.gmra.mxu0 %vm353_vm1, %v342_v11 }
  0xdb   : > { %v430_v12 = vpop.f32.mrf.mxu0 }
  0xdc   : > { %435 = vst [vmem:[%s318_s28] sm:$0xff] %v430_v12  ;;  %v442_v16 = vmul.f32 %v430_v12, %v430_v12 }
  0xdd   : > { %v432_v13 = vpop.f32.mrf.mxu0 }
  0xde   : > { %436 = vst [vmem:[%s318_s28 + $0x8] sm:$0xff] %v432_v13  ;;  %v443_v14 = vmul.f32 %v432_v13, %v432_v13  ;;  %v437_v15 = vadd.f32 %v432_v13, %v430_v12 }
  0xe0   : > { %438 = vadd.xlane.f32.xlu0 %v437_v15  ;;  %v444_v17 = vadd.f32 %v443_v14, %v442_v16 }
  0xe4   : > { %445 = vadd.xlane.f32.xlu0 %v444_v17 }
 0x169   : > { %v439_v18 = vpop.xlane.xlu0 %438 }
 0x16a   : > { %441 = vst.msk [vmem:[%s330_s6] sm:$0xff] %vm440_vm2, %v439_v18 }
 0x16d   : > { %v446_v19 = vpop.xlane.xlu0 %445 }
 0x16e   : > { %447 = vst.msk [vmem:[%s341_s9] sm:$0xff] %vm440_vm2, %v446_v19 }
 0x16f PF: > { %s15_s17 = sadd.s32 1, %s754_s17   ;;  %s834_s15 = smov %s750_s16 }
 0x170   : > { %p12_p5 = scmp.ge.s32.totalorder %s15_s17, 4   ;;  %s835_s16 = smov %s837_s18 }
 0x172   :  { %14 = sbr.rel (!%p12_p5) target bundleno = 2 (0x2), region = 85 }

</bundles_post_ra>
